<compile_context>
chip_gen: v7x
topology: tpu7x:2x2x1
jax: 0.10.0
libtpu: 0.0.40
codegen_flags: <defaults>
</compile_context>

<pallas_src>
import numpy as np
import jax
import jax.numpy as jnp
from jax.experimental import pallas as pl
from jax.experimental.pallas import tpu as pltpu


# ------------------------- Pallas kernel ----------------------------------

def make_mlp_kernel(num_layers: int, n_points: int):
    """Fused MLP kernel body for a fixed (static) number of hidden layers.

    Feature-major layout: activations (nn, N), output (out_dim, N)."""
    inv_n = np.float32(1.0 / n_points)
    eps = np.float32(1e-5)

    def bn_relu6(z, gamma, beta):
        # Training-mode BatchNorm1d (batch mean, biased batch variance,
        # eps=1e-5) with one-pass statistics folded into a per-feature
        # scale/shift, followed by ReLU6.  z: (nn, N); gamma/beta: (nn, 1).
        mean = jnp.sum(z, axis=1, keepdims=True) * inv_n       # (nn, 1)
        ex2 = jnp.sum(z * z, axis=1, keepdims=True) * inv_n    # (nn, 1)
        var = ex2 - mean * mean                                 # biased var
        scale = gamma * jax.lax.rsqrt(var + eps)                # EUP rsqrt
        shift = beta - mean * scale
        return jnp.clip(z * scale + shift, 0.0, 6.0)            # (nn, N)

    def kernel(*refs):
        if num_layers > 1:
            x_ref, w0t_ref, wht_ref, gb_ref, woutt_ref, boutt_ref, out_ref = refs
        else:
            x_ref, w0t_ref, gb_ref, woutt_ref, boutt_ref, out_ref = refs
            wht_ref = None

        x = x_ref[...].astype(jnp.float32)                      # (2, N)
        w0t = w0t_ref[...]                                      # (nn, 2)

        # ---- Layer 0: K=2 matmul as two VPU broadcast FMAs (no MXU pass).
        # Hidden-layer bias dropped: exactly absorbed by BN mean subtraction.
        z = w0t[:, 0:1] * x[0:1, :] + w0t[:, 1:2] * x[1:2, :]   # (nn, N)
        gb0 = gb_ref[0]                                         # (nn, 2)
        h = bn_relu6(z, gb0[:, 0:1], gb0[:, 1:2])

        # ---- Remaining hidden layers: W^T @ h MXU matmuls (output lanes = N),
        # bias-free, fused one-pass BN + ReLU6.
        for l in range(1, num_layers):
            z = jnp.dot(wht_ref[l - 1], h, preferred_element_type=jnp.float32)
            gbl = gb_ref[l]
            h = bn_relu6(z, gbl[:, 0:1], gbl[:, 1:2])

        # ---- Output layer + softmax over the (sublane) class axis + 1e-4.
        logits = jnp.dot(woutt_ref[...], h,
                         preferred_element_type=jnp.float32) + boutt_ref[...]
        m = jnp.max(logits, axis=0, keepdims=True)              # (1, N)
        e = jnp.exp(logits - m)
        s = jnp.sum(e, axis=0, keepdims=True)                   # (1, N)
        # Exact reciprocal: approx=True EUP recip risks the 1e-5 tolerance.
        out_ref[...] = 1e-4 + e * (1.0 / s)                     # (out_dim, N)

        # TODO(synk): fixedIdx in-place override (out[fixedIdx,0]=0.95,
        # out[fixedIdx,1:]=0.01) is a data-dependent scatter; this kernel
        # implements the fixedIdx=None forward path.

    return kernel


def topo_mlp_forward(x, params):
    """x: (N, 2) f32 points; params: flat list [W,b,gamma,beta]*L + [W_out,b_out].

    Returns (N, out_dim) = 1e-4 + softmax(MLP(x)), matching the PyTorch
    module's forward(fixedIdx=None)."""
    num_layers = (len(params) - 2) // 4
    n_points = x.shape[0]
    num_neurons = params[0].shape[1]
    out_dim = params[-2].shape[1]

    # ---- Feature-major packing: N goes on the 128-lane axis in the kernel.
    x_t = x.T                                                   # (2, N)
    w0t = params[0].T                                           # (nn, 2)
    gb = jnp.stack(
        [jnp.stack([params[4 * l + 2][0], params[4 * l + 3][0]], axis=-1)
         for l in range(num_layers)], axis=0)                   # (L, nn, 2)
    w_out_t = params[-2].T                                      # (out_dim, nn)
    b_out_t = params[-1].T                                      # (out_dim, 1)
    # NOTE: hidden-layer biases params[4l+1] are intentionally not passed:
    # they are exactly absorbed by training-mode BatchNorm's mean subtraction.

    inputs = [x_t, w0t]
    if num_layers > 1:
        wht = jnp.stack([params[4 * l].T for l in range(1, num_layers)], axis=0)
        inputs.append(wht)                                      # (L-1, nn, nn)
    inputs += [gb, w_out_t, b_out_t]

    # ---- Advisory cost estimate for XLA scheduling around the custom call.
    flops = (2 * n_points * 2 * num_neurons
             + (num_layers - 1) * 2 * n_points * num_neurons * num_neurons
             + 2 * n_points * num_neurons * out_dim
             + num_layers * 6 * n_points * num_neurons          # BN + ReLU6
             + 6 * n_points * out_dim)                          # softmax tail
    transcendentals = n_points * (out_dim + 1) + num_layers * num_neurons
    in_bytes = 4 * sum(int(np.prod(a.shape)) for a in inputs)
    out_bytes = 4 * n_points * out_dim
    bytes_accessed = in_bytes + out_bytes

    # ---- VMEM budget from the real resident footprint, with headroom, capped
    # so it stays comfortable on v7x's 64 MiB per-TC VMEM.
    act_bytes = 4 * num_neurons * n_points
    footprint = in_bytes + out_bytes + 4 * act_bytes
    vmem_limit = int(min(max(2 * footprint, 16 * 1024 * 1024), 48 * 1024 * 1024))

    out_t = pl.pallas_call(
        make_mlp_kernel(num_layers, n_points),
        out_shape=jax.ShapeDtypeStruct((out_dim, n_points), jnp.float32),
        in_specs=[pl.BlockSpec(memory_space=pltpu.MemorySpace.VMEM)] * len(inputs),
        out_specs=pl.BlockSpec(memory_space=pltpu.MemorySpace.VMEM),
        cost_estimate=pl.CostEstimate(flops=int(flops),
                                      transcendentals=int(transcendentals),
                                      bytes_accessed=int(bytes_accessed)),
        compiler_params=pltpu.CompilerParams(vmem_limit_bytes=vmem_limit),
    )(*inputs)
    return out_t.T                                              # (N, out_dim)


# ------------------------- parameter / input setup -------------------------

def xavier_uniform(key, fan_in, fan_out):
    bound = float(np.sqrt(6.0 / (fan_in + fan_out)))
    return jax.random.uniform(key, (fan_in, fan_out), jnp.float32, -bound, bound)


def init_params(key, num_layers, num_neurons, input_dim, output_dim):
    """Deterministic init mirroring the module: xavier_uniform weights, zero
    biases, BatchNorm gamma=1 / beta=0."""
    params = []
    current_dim = input_dim
    for _ in range(num_layers):
        key, wk = jax.random.split(key)
        params.append(xavier_uniform(wk, current_dim, num_neurons))      # W (in, out)
        params.append(jnp.zeros((1, num_neurons), jnp.float32))          # b
        params.append(jnp.ones((1, num_neurons), jnp.float32))           # gamma
        params.append(jnp.zeros((1, num_neurons), jnp.float32))          # beta
        current_dim = num_neurons
    key, wk = jax.random.split(key)
    params.append(xavier_uniform(wk, current_dim, output_dim))           # W_out
    params.append(jnp.zeros((1, output_dim), jnp.float32))               # b_out
    return params


def generate_points(nelx, nely):
    """Same element-center grid as TopologyOptimizationMLP._generate_points."""
    xy = np.zeros((nelx * nely, 2), dtype=np.float32)
    ctr = 0
    for i in range(nelx):
        for j in range(nely):
            xy[ctr, 0] = i + 0.5
            xy[ctr, 1] = j + 0.5
            ctr += 1
    return jnp.asarray(xy)


# ------------------------- reference (plain JAX) ---------------------------

def reference_forward(x, params):
    """Matches the PyTorch forward (training-mode BatchNorm, biases included)."""
    num_layers = (len(params) - 2) // 4
    h = x
    for l in range(num_layers):
        w, b, g, beta = params[4 * l: 4 * l + 4]
        z = h @ w + b
        mean = jnp.mean(z, axis=0, keepdims=True)
        var = jnp.mean((z - mean) ** 2, axis=0, keepdims=True)
        z = (z - mean) / jnp.sqrt(var + 1e-5) * g + beta
        h = jnp.clip(z, 0.0, 6.0)
    logits = h @ params[-2] + params[-1]
    return 1e-4 + jax.nn.softmax(logits, axis=1)


# ------------------------- main --------------------------------------------

if __name__ == "__main__":
    num_layers = 3
    num_neurons = 32
    nelx, nely = 16, 16
    num_materials = 3
    input_dim = 2
    output_dim = num_materials + 1

    key = jax.random.PRNGKey(0)
    params = init_params(key, num_layers, num_neurons, input_dim, output_dim)
    x = generate_points(nelx, nely)           # (256, 2)

    out = topo_mlp_forward(x, params)
    out = jax.block_until_ready(out)

    ref = reference_forward(x, params)
    np.testing.assert_allclose(np.asarray(out), np.asarray(ref), rtol=1e-5, atol=1e-5)

    assert out.shape == (nelx * nely, output_dim)
    print("KERNEL_OK")
</pallas_src>

<mosaic_0001>
module attributes {stable_mosaic.version = 11 : i64} {
  func.func @kernel(%arg0: memref<2x256xf32, #tpu.memory_space<vmem>>, %arg1: memref<32x2xf32, #tpu.memory_space<vmem>>, %arg2: memref<2x32x32xf32, #tpu.memory_space<vmem>>, %arg3: memref<3x32x2xf32, #tpu.memory_space<vmem>>, %arg4: memref<4x32xf32, #tpu.memory_space<vmem>>, %arg5: memref<4x1xf32, #tpu.memory_space<vmem>>, %arg6: memref<4x256xf32, #tpu.memory_space<vmem>>) attributes {dimension_semantics = [], scalar_prefetch = 0 : i64, scratch_operands = 0 : i64, tpu.core_type = #tpu.core_type<tc>} {
    %c0 = arith.constant 0 : index
    %c0_0 = arith.constant 0 : index
    %0 = vector.load %arg0[%c0, %c0_0] : memref<2x256xf32, #tpu.memory_space<vmem>>, vector<2x256xf32>
    %c0_1 = arith.constant 0 : index
    %c0_2 = arith.constant 0 : index
    %1 = vector.load %arg1[%c0_1, %c0_2] : memref<32x2xf32, #tpu.memory_space<vmem>>, vector<32x2xf32>
    %2 = vector.extract_strided_slice %1 {offsets = [0, 0], sizes = [32, 1], strides = [1, 1]} : vector<32x2xf32> to vector<32x1xf32>
    %3 = vector.extract_strided_slice %0 {offsets = [0, 0], sizes = [1, 256], strides = [1, 1]} : vector<2x256xf32> to vector<1x256xf32>
    %4 = vector.broadcast %2 : vector<32x1xf32> to vector<32x256xf32>
    %5 = vector.broadcast %3 : vector<1x256xf32> to vector<32x256xf32>
    %6 = arith.mulf %4, %5 : vector<32x256xf32>
    %7 = vector.extract_strided_slice %1 {offsets = [0, 1], sizes = [32, 1], strides = [1, 1]} : vector<32x2xf32> to vector<32x1xf32>
    %8 = vector.extract_strided_slice %0 {offsets = [1, 0], sizes = [1, 256], strides = [1, 1]} : vector<2x256xf32> to vector<1x256xf32>
    %9 = vector.broadcast %7 : vector<32x1xf32> to vector<32x256xf32>
    %10 = vector.broadcast %8 : vector<1x256xf32> to vector<32x256xf32>
    %11 = arith.mulf %9, %10 : vector<32x256xf32>
    %12 = arith.addf %6, %11 : vector<32x256xf32>
    %c0_3 = arith.constant 0 : index
    %c0_4 = arith.constant 0 : index
    %c0_5 = arith.constant 0 : index
    %13 = vector.load %arg3[%c0_3, %c0_4, %c0_5] : memref<3x32x2xf32, #tpu.memory_space<vmem>>, vector<1x32x2xf32>
    %14 = vector.shape_cast %13 : vector<1x32x2xf32> to vector<32x2xf32>
    %15 = vector.extract_strided_slice %14 {offsets = [0, 0], sizes = [32, 1], strides = [1, 1]} : vector<32x2xf32> to vector<32x1xf32>
    %16 = vector.extract_strided_slice %14 {offsets = [0, 1], sizes = [32, 1], strides = [1, 1]} : vector<32x2xf32> to vector<32x1xf32>
    %cst = arith.constant dense<0.000000e+00> : vector<32xf32>
    %17 = vector.multi_reduction <add>, %12, %cst [1] : vector<32x256xf32> to vector<32xf32>
    %18 = vector.shape_cast %17 : vector<32xf32> to vector<32x1xf32>
    %cst_6 = arith.constant 3.906250e-03 : f32
    %19 = vector.broadcast %cst_6 : f32 to vector<32x1xf32>
    %20 = arith.mulf %18, %19 : vector<32x1xf32>
    %21 = arith.mulf %12, %12 : vector<32x256xf32>
    %cst_7 = arith.constant dense<0.000000e+00> : vector<32xf32>
    %22 = vector.multi_reduction <add>, %21, %cst_7 [1] : vector<32x256xf32> to vector<32xf32>
    %23 = vector.shape_cast %22 : vector<32xf32> to vector<32x1xf32>
    %cst_8 = arith.constant 3.906250e-03 : f32
    %24 = vector.broadcast %cst_8 : f32 to vector<32x1xf32>
    %25 = arith.mulf %23, %24 : vector<32x1xf32>
    %26 = arith.mulf %20, %20 : vector<32x1xf32>
    %27 = arith.subf %25, %26 : vector<32x1xf32>
    %cst_9 = arith.constant 9.99999974E-6 : f32
    %28 = vector.broadcast %cst_9 : f32 to vector<32x1xf32>
    %29 = arith.addf %27, %28 : vector<32x1xf32>
    %30 = math.rsqrt %29 : vector<32x1xf32>
    %31 = arith.mulf %15, %30 : vector<32x1xf32>
    %32 = arith.mulf %20, %31 : vector<32x1xf32>
    %33 = arith.subf %16, %32 : vector<32x1xf32>
    %34 = vector.broadcast %31 : vector<32x1xf32> to vector<32x256xf32>
    %35 = arith.mulf %12, %34 : vector<32x256xf32>
    %36 = vector.broadcast %33 : vector<32x1xf32> to vector<32x256xf32>
    %37 = arith.addf %35, %36 : vector<32x256xf32>
    %cst_10 = arith.constant 0.000000e+00 : f32
    %cst_11 = arith.constant 6.000000e+00 : f32
    %38 = vector.broadcast %cst_10 : f32 to vector<32x256xf32>
    %39 = arith.maximumf %38, %37 : vector<32x256xf32>
    %40 = vector.broadcast %cst_11 : f32 to vector<32x256xf32>
    %41 = arith.minimumf %40, %39 : vector<32x256xf32>
    %c0_12 = arith.constant 0 : index
    %c0_13 = arith.constant 0 : index
    %c0_14 = arith.constant 0 : index
    %42 = vector.load %arg2[%c0_12, %c0_13, %c0_14] : memref<2x32x32xf32, #tpu.memory_space<vmem>>, vector<1x32x32xf32>
    %43 = vector.shape_cast %42 : vector<1x32x32xf32> to vector<32x32xf32>
    %cst_15 = arith.constant dense<0.000000e+00> : vector<32x256xf32>
    %44 = tpu.matmul %43, %41, %cst_15 {dimension_numbers = #tpu.dot_dimension_numbers<[1], [0], [0], [1], [0, 0, 1, 1], [], []>} : vector<32x32xf32>, vector<32x256xf32>, vector<32x256xf32> -> vector<32x256xf32>
    %c1 = arith.constant 1 : index
    %c0_16 = arith.constant 0 : index
    %c0_17 = arith.constant 0 : index
    %45 = vector.load %arg3[%c1, %c0_16, %c0_17] : memref<3x32x2xf32, #tpu.memory_space<vmem>>, vector<1x32x2xf32>
    %46 = vector.shape_cast %45 : vector<1x32x2xf32> to vector<32x2xf32>
    %47 = vector.extract_strided_slice %46 {offsets = [0, 0], sizes = [32, 1], strides = [1, 1]} : vector<32x2xf32> to vector<32x1xf32>
    %48 = vector.extract_strided_slice %46 {offsets = [0, 1], sizes = [32, 1], strides = [1, 1]} : vector<32x2xf32> to vector<32x1xf32>
    %cst_18 = arith.constant dense<0.000000e+00> : vector<32xf32>
    %49 = vector.multi_reduction <add>, %44, %cst_18 [1] : vector<32x256xf32> to vector<32xf32>
    %50 = vector.shape_cast %49 : vector<32xf32> to vector<32x1xf32>
    %cst_19 = arith.constant 3.906250e-03 : f32
    %51 = vector.broadcast %cst_19 : f32 to vector<32x1xf32>
    %52 = arith.mulf %50, %51 : vector<32x1xf32>
    %53 = arith.mulf %44, %44 : vector<32x256xf32>
    %cst_20 = arith.constant dense<0.000000e+00> : vector<32xf32>
    %54 = vector.multi_reduction <add>, %53, %cst_20 [1] : vector<32x256xf32> to vector<32xf32>
    %55 = vector.shape_cast %54 : vector<32xf32> to vector<32x1xf32>
    %cst_21 = arith.constant 3.906250e-03 : f32
    %56 = vector.broadcast %cst_21 : f32 to vector<32x1xf32>
    %57 = arith.mulf %55, %56 : vector<32x1xf32>
    %58 = arith.mulf %52, %52 : vector<32x1xf32>
    %59 = arith.subf %57, %58 : vector<32x1xf32>
    %cst_22 = arith.constant 9.99999974E-6 : f32
    %60 = vector.broadcast %cst_22 : f32 to vector<32x1xf32>
    %61 = arith.addf %59, %60 : vector<32x1xf32>
    %62 = math.rsqrt %61 : vector<32x1xf32>
    %63 = arith.mulf %47, %62 : vector<32x1xf32>
    %64 = arith.mulf %52, %63 : vector<32x1xf32>
    %65 = arith.subf %48, %64 : vector<32x1xf32>
    %66 = vector.broadcast %63 : vector<32x1xf32> to vector<32x256xf32>
    %67 = arith.mulf %44, %66 : vector<32x256xf32>
    %68 = vector.broadcast %65 : vector<32x1xf32> to vector<32x256xf32>
    %69 = arith.addf %67, %68 : vector<32x256xf32>
    %cst_23 = arith.constant 0.000000e+00 : f32
    %cst_24 = arith.constant 6.000000e+00 : f32
    %70 = vector.broadcast %cst_23 : f32 to vector<32x256xf32>
    %71 = arith.maximumf %70, %69 : vector<32x256xf32>
    %72 = vector.broadcast %cst_24 : f32 to vector<32x256xf32>
    %73 = arith.minimumf %72, %71 : vector<32x256xf32>
    %c1_25 = arith.constant 1 : index
    %c0_26 = arith.constant 0 : index
    %c0_27 = arith.constant 0 : index
    %74 = vector.load %arg2[%c1_25, %c0_26, %c0_27] : memref<2x32x32xf32, #tpu.memory_space<vmem>>, vector<1x32x32xf32>
    %75 = vector.shape_cast %74 : vector<1x32x32xf32> to vector<32x32xf32>
    %cst_28 = arith.constant dense<0.000000e+00> : vector<32x256xf32>
    %76 = tpu.matmul %75, %73, %cst_28 {dimension_numbers = #tpu.dot_dimension_numbers<[1], [0], [0], [1], [0, 0, 1, 1], [], []>} : vector<32x32xf32>, vector<32x256xf32>, vector<32x256xf32> -> vector<32x256xf32>
    %c2 = arith.constant 2 : index
    %c0_29 = arith.constant 0 : index
    %c0_30 = arith.constant 0 : index
    %77 = vector.load %arg3[%c2, %c0_29, %c0_30] : memref<3x32x2xf32, #tpu.memory_space<vmem>>, vector<1x32x2xf32>
    %78 = vector.shape_cast %77 : vector<1x32x2xf32> to vector<32x2xf32>
    %79 = vector.extract_strided_slice %78 {offsets = [0, 0], sizes = [32, 1], strides = [1, 1]} : vector<32x2xf32> to vector<32x1xf32>
    %80 = vector.extract_strided_slice %78 {offsets = [0, 1], sizes = [32, 1], strides = [1, 1]} : vector<32x2xf32> to vector<32x1xf32>
    %cst_31 = arith.constant dense<0.000000e+00> : vector<32xf32>
    %81 = vector.multi_reduction <add>, %76, %cst_31 [1] : vector<32x256xf32> to vector<32xf32>
    %82 = vector.shape_cast %81 : vector<32xf32> to vector<32x1xf32>
    %cst_32 = arith.constant 3.906250e-03 : f32
    %83 = vector.broadcast %cst_32 : f32 to vector<32x1xf32>
    %84 = arith.mulf %82, %83 : vector<32x1xf32>
    %85 = arith.mulf %76, %76 : vector<32x256xf32>
    %cst_33 = arith.constant dense<0.000000e+00> : vector<32xf32>
    %86 = vector.multi_reduction <add>, %85, %cst_33 [1] : vector<32x256xf32> to vector<32xf32>
    %87 = vector.shape_cast %86 : vector<32xf32> to vector<32x1xf32>
    %cst_34 = arith.constant 3.906250e-03 : f32
    %88 = vector.broadcast %cst_34 : f32 to vector<32x1xf32>
    %89 = arith.mulf %87, %88 : vector<32x1xf32>
    %90 = arith.mulf %84, %84 : vector<32x1xf32>
    %91 = arith.subf %89, %90 : vector<32x1xf32>
    %cst_35 = arith.constant 9.99999974E-6 : f32
    %92 = vector.broadcast %cst_35 : f32 to vector<32x1xf32>
    %93 = arith.addf %91, %92 : vector<32x1xf32>
    %94 = math.rsqrt %93 : vector<32x1xf32>
    %95 = arith.mulf %79, %94 : vector<32x1xf32>
    %96 = arith.mulf %84, %95 : vector<32x1xf32>
    %97 = arith.subf %80, %96 : vector<32x1xf32>
    %98 = vector.broadcast %95 : vector<32x1xf32> to vector<32x256xf32>
    %99 = arith.mulf %76, %98 : vector<32x256xf32>
    %100 = vector.broadcast %97 : vector<32x1xf32> to vector<32x256xf32>
    %101 = arith.addf %99, %100 : vector<32x256xf32>
    %cst_36 = arith.constant 0.000000e+00 : f32
    %cst_37 = arith.constant 6.000000e+00 : f32
    %102 = vector.broadcast %cst_36 : f32 to vector<32x256xf32>
    %103 = arith.maximumf %102, %101 : vector<32x256xf32>
    %104 = vector.broadcast %cst_37 : f32 to vector<32x256xf32>
    %105 = arith.minimumf %104, %103 : vector<32x256xf32>
    %c0_38 = arith.constant 0 : index
    %c0_39 = arith.constant 0 : index
    %106 = vector.load %arg4[%c0_38, %c0_39] : memref<4x32xf32, #tpu.memory_space<vmem>>, vector<4x32xf32>
    %cst_40 = arith.constant dense<0.000000e+00> : vector<4x256xf32>
    %107 = tpu.matmul %106, %105, %cst_40 {dimension_numbers = #tpu.dot_dimension_numbers<[1], [0], [0], [1], [0, 0, 1, 1], [], []>} : vector<4x32xf32>, vector<32x256xf32>, vector<4x256xf32> -> vector<4x256xf32>
    %c0_41 = arith.constant 0 : index
    %c0_42 = arith.constant 0 : index
    %108 = vector.load %arg5[%c0_41, %c0_42] : memref<4x1xf32, #tpu.memory_space<vmem>>, vector<4x1xf32>
    %109 = vector.broadcast %108 : vector<4x1xf32> to vector<4x256xf32>
    %110 = arith.addf %107, %109 : vector<4x256xf32>
    %cst_43 = arith.constant dense<0xFF800000> : vector<256xf32>
    %111 = vector.multi_reduction <maximumf>, %110, %cst_43 [0] : vector<4x256xf32> to vector<256xf32>
    %112 = vector.shape_cast %111 : vector<256xf32> to vector<1x256xf32>
    %113 = vector.broadcast %112 : vector<1x256xf32> to vector<4x256xf32>
    %114 = arith.subf %110, %113 : vector<4x256xf32>
    %115 = math.exp %114 : vector<4x256xf32>
    %cst_44 = arith.constant dense<0.000000e+00> : vector<256xf32>
    %116 = vector.multi_reduction <add>, %115, %cst_44 [0] : vector<4x256xf32> to vector<256xf32>
    %117 = vector.shape_cast %116 : vector<256xf32> to vector<1x256xf32>
    %cst_45 = arith.constant 1.000000e+00 : f32
    %118 = vector.broadcast %cst_45 : f32 to vector<1x256xf32>
    %119 = arith.divf %118, %117 : vector<1x256xf32>
    %120 = vector.broadcast %119 : vector<1x256xf32> to vector<4x256xf32>
    %121 = arith.mulf %115, %120 : vector<4x256xf32>
    %cst_46 = arith.constant 9.99999974E-5 : f32
    %122 = vector.broadcast %cst_46 : f32 to vector<4x256xf32>
    %123 = arith.addf %122, %121 : vector<4x256xf32>
    %c0_47 = arith.constant 0 : index
    %c0_48 = arith.constant 0 : index
    %124 = vector.load %arg6[%c0_47, %c0_48] : memref<4x256xf32, #tpu.memory_space<vmem>>, vector<4x256xf32>
    tpu.vector_store %arg6[%c0_47, %c0_48], %123 {strides = array<i32>} : memref<4x256xf32, #tpu.memory_space<vmem>>, vector<4x256xf32>,
    return
  }
}

</mosaic_0001>

<bundles_post_ra>
// kernel: tpu_custom_call.1
= control target key start
LH: loop header
LB: loop body
LE: loop exit
PB: predicated region body
PF: predicated region fallthrough
CT: control target
= control target key end

     0   :  { %v1088_v1 = vmov 1   ;;  %v1089_v2 = vmov 0   ;;  %s1418_s0 = inlined_call_operand.vmem [shape: f32[2,256], index: 0, kind: input, shape index: {}]   ;;  %s1419_s1 = inlined_call_operand.vmem [shape: f32[32,2], index: 1, kind: input, shape index: {}]   ;;  %s1420_s2 = inlined_call_operand.vmem [shape: f32[2,32,32], index: 2, kind: input, shape index: {}]   ;;  %s1421_s3 = inlined_call_operand.vmem [shape: f32[3,32,2], index: 3, kind: input, shape index: {}]   ;;  %s1422_s4 = inlined_call_operand.vmem [shape: f32[4,32], index: 4, kind: input, shape index: {}]   ;;  %s1423_s5 = inlined_call_operand.vmem [shape: f32[4,1], index: 5, kind: input, shape index: {}]   ;;  %s1424_s6 = inlined_call_operand.hbm [shape: f32[4,256], index: 6, kind: output, shape index: {}]  }
   0x1   :  { %v25_v0 = vld [vmem:[%s1419_s1] sm:$0xff]  ;;  %1014 = vset.pattern.permute.xlu1 %v1088_v1  ;;  %1013 = vset.pattern.permute.xlu0 %v1089_v2 }
   0x2   :  { %11 = vsyncpa [#allocation3], 0  ;;  %77 = vperm.xlu1 %1014, %v25_v0   ;;  %31 = vperm.xlu0 %1013, %v25_v0   ;;  %v26_v3 = vld [vmem:[%s1419_s1 + $0x8] sm:$0xff]  ;;  %v27_v4 = vld [vmem:[%s1419_s1 + $0x10] sm:$0xff]  ;;  %v50_v6 = vlaneseq  ;;  %s1090_s13 = smov 1   ;;  %vm290_vm0 = vcmask 261120  }
   0x3   :  { %v28_v5 = vld [vmem:[%s1419_s1 + $0x18] sm:$0xff]  ;;  %v24_v12 = vld [vmem:[%s1418_s0] sm:$0xf]  ;;  %vm901_vm1 = vcmask 1043456  }
   0x4   :  { %v51_v7 = vshrl.u32 %v50_v6, 7 }
   0x6   :  { %81 = vperm.xlu1 %1014, %v26_v3   ;;  %36 = vperm.xlu0 %1013, %v26_v3   ;;  %v94_v8 = vsub.s32 1, %v51_v7  ;;  %v98_v9 = vsub.s32 3, %v51_v7  ;;  %v52_v10 = vsub.s32 0, %v51_v7  ;;  %v56_v11 = vsub.s32 2, %v51_v7 }
   0x8   :  { %v95_v13 = vrot.slane %v24_v12, %v94_v8  ;;  %v99_v14 = vrot.slane %v24_v12, %v98_v9  ;;  %v53_v15 = vrot.slane %v24_v12, %v52_v10  ;;  %v57_v16 = vrot.slane %v24_v12, %v56_v11 }
   0xa   :  { %1015 = vset.pattern.permute.xlu1 %v1089_v2  ;;  %41 = vperm.xlu0 %1013, %v27_v4   ;;  %v105_v17 = vrot.slane %v95_v13, %v94_v8  ;;  %v109_v18 = vrot.slane %v99_v14, %v94_v8  ;;  %v63_v19 = vrot.slane %v53_v15, %v52_v10 }
   0xb   :  { %46 = vperm.xlu1 %1015, %v28_v5   ;;  %v67_v20 = vrot.slane %v57_v16, %v52_v10 }
   0xe   :  { %1016 = vset.pattern.permute.xlu0 %v1088_v1 }
   0xf   :  { %1017 = vset.pattern.permute.xlu1 %v1088_v1  ;;  %85 = vperm.xlu0 %1016, %v27_v4  }
  0x10   :  { %89 = vperm.xlu1 %1017, %v28_v5  }
  0x13   :  { %1019 = vset.pattern.permute.xlu0 %v1089_v2 }
  0x14   :  { %1018 = vset.pattern.permute.xlu1 %v1089_v2 }
  0x81   :  { %v78_v21 = vpop.permute.xlu1 %77  ;;  %v32_v22 = vpop.permute.xlu0 %31 }
  0x82   :  { %v110_v23 = vmul.f32 %v105_v17, %v78_v21  ;;  %v111_v24 = vmul.f32 %v109_v18, %v78_v21  ;;  %v68_v25 = vmul.f32 %v63_v19, %v32_v22  ;;  %v69_v26 = vmul.f32 %v67_v20, %v32_v22 }
  0x84   :  { %v1150_v27 = vadd.f32 %v110_v23, %v68_v25  ;;  %v1152_v28 = vadd.f32 %v111_v24, %v69_v26 }
  0x85   :  { %v82_v29 = vpop.permute.xlu1 %81  ;;  %v37_v30 = vpop.permute.xlu0 %36 }
  0x86   :  { %v112_v31 = vmul.f32 %v105_v17, %v82_v29  ;;  %v113_v32 = vmul.f32 %v109_v18, %v82_v29  ;;  %v70_v33 = vmul.f32 %v63_v19, %v37_v30  ;;  %v71_v34 = vmul.f32 %v67_v20, %v37_v30 }
  0x87   :  { %v130_v35 = vadd.f32 %v1152_v28, %v1150_v27  ;;  %v146_v56 = vmul.f32 %v1150_v27, %v1150_v27  ;;  %v147_v57 = vmul.f32 %v1152_v28, %v1152_v28 }
  0x88   :  { %v1156_v36 = vadd.f32 %v112_v31, %v70_v33  ;;  %v1158_v37 = vadd.f32 %v113_v32, %v71_v34 }
  0x89   :  { %131 = vadd.xlane.f32.xlu1 %v130_v35  ;;  %v42_v38 = vpop.permute.xlu0 %41  ;;  %v154_v61 = vadd.f32 %v147_v57, %v146_v56 }
  0x8a   :  { %v47_v39 = vpop.permute.xlu1 %46  ;;  %v133_v40 = vadd.f32 %v1158_v37, %v1156_v36  ;;  %v72_v42 = vmul.f32 %v63_v19, %v42_v38  ;;  %v73_v43 = vmul.f32 %v67_v20, %v42_v38  ;;  %v148_v59 = vmul.f32 %v1156_v36, %v1156_v36 }
  0x8b   :  { %v74_v47 = vmul.f32 %v63_v19, %v47_v39  ;;  %v75_v48 = vmul.f32 %v67_v20, %v47_v39  ;;  %v149_v60 = vmul.f32 %v1158_v37, %v1158_v37  ;;  %v126_v39 = vld [vmem:[%s1421_s3] sm:$0xff] }
  0x8c   :  { %134 = vadd.xlane.f32.xlu0 %v133_v40  ;;  %v127_v40 = vld [vmem:[%s1421_s3 + $0x8] sm:$0xff] }
  0x8d   :  { %v157_v0 = vadd.f32 %v149_v60, %v148_v59 }
  0x8e   :  { %v86_v41 = vpop.permute.xlu0 %85 }
  0x8f   :  { %v114_v44 = vmul.f32 %v105_v17, %v86_v41  ;;  %v115_v45 = vmul.f32 %v109_v18, %v86_v41  ;;  %v90_v46 = vpop.permute.xlu1 %89 }
  0x90   :  { %v116_v49 = vmul.f32 %v105_v17, %v90_v46  ;;  %v117_v50 = vmul.f32 %v109_v18, %v90_v46 }
  0x91   :  { %v1162_v51 = vadd.f32 %v114_v44, %v72_v42  ;;  %v1164_v52 = vadd.f32 %v115_v45, %v73_v43  ;;  %v128_v45 = vld [vmem:[%s1421_s3 + $0x10] sm:$0xff] }
  0x92   :  { %v1166_v53 = vadd.f32 %v116_v49, %v74_v47  ;;  %v1168_v54 = vadd.f32 %v117_v50, %v75_v48  ;;  %v129_v47 = vld [vmem:[%s1421_s3 + $0x18] sm:$0xff] }
  0x93   :  { %v136_v55 = vadd.f32 %v1164_v52, %v1162_v51  ;;  %v150_v62 = vmul.f32 %v1162_v51, %v1162_v51  ;;  %v151_v63 = vmul.f32 %v1164_v52, %v1164_v52 }
  0x94   :  { %v139_v58 = vadd.f32 %v1168_v54, %v1166_v53  ;;  %v152_v3 = vmul.f32 %v1166_v53, %v1166_v53  ;;  %v153_v4 = vmul.f32 %v1168_v54, %v1168_v54 }
  0x95   :  { %137 = vadd.xlane.f32.xlu0 %v136_v55  ;;  %v160_v5 = vadd.f32 %v151_v63, %v150_v62 }
  0x96   :  { %140 = vadd.xlane.f32.xlu1 %v139_v58  ;;  %v163_v6 = vadd.f32 %v153_v4, %v152_v3 }
  0x99   :  { %155 = vadd.xlane.f32.xlu0 %v154_v61 }
  0x9a   :  { %158 = vadd.xlane.f32.xlu1 %v157_v0 }
  0x9d   :  { %161 = vadd.xlane.f32.xlu0 %v160_v5  ;;  %v1091_v5 = vmov 0.0  }
  0x9e   :  { %164 = vadd.xlane.f32.xlu1 %v163_v6  ;;  %367 = vmatprep.mubr.f32.mxu0 %v1091_v5 }
  0x9f   :  { %634 = vmatprep.mubr.f32.mxu1 %v1091_v5 }
 0x116   :  { %v132_v8 = vpop.xlane.xlu1 %131 }
 0x117   :  { %v142_v10 = vmul.f32 0.00390625, %v132_v8 }
 0x119   :  { %v135_v7 = vpop.xlane.xlu0 %134  ;;  %v170_v14 = vmul.f32 %v142_v10, %v142_v10 }
 0x11a   :  { %v143_v12 = vmul.f32 0.00390625, %v135_v7 }
 0x11c   :  { %v171_v18 = vmul.f32 %v143_v12, %v143_v12 }
 0x122   :  { %v138_v9 = vpop.xlane.xlu0 %137 }
 0x123   :  { %v141_v11 = vpop.xlane.xlu1 %140  ;;  %v144_v15 = vmul.f32 0.00390625, %v138_v9 }
 0x124   :  { %v145_v19 = vmul.f32 0.00390625, %v141_v11 }
 0x125   :  { %v172_v24 = vmul.f32 %v144_v15, %v144_v15 }
 0x126   :  { %v156_v13 = vpop.xlane.xlu0 %155  ;;  %v173_v30 = vmul.f32 %v145_v19, %v145_v19 }
 0x127   :  { %v166_v16 = vmul.f32 0.00390625, %v156_v13  ;;  %v159_v17 = vpop.xlane.xlu1 %158 }
 0x128   :  { %v167_v20 = vmul.f32 0.00390625, %v159_v17 }
 0x129   :  { %v174_v21 = vsub.f32 %v166_v16, %v170_v14 }
 0x12a   :  { %v175_v22 = vsub.f32 %v167_v20, %v171_v18  ;;  %v162_v23 = vpop.xlane.xlu0 %161 }
 0x12b   :  { %v178_v25 = vadd.f32 1e-05, %v174_v21  ;;  %v168_v26 = vmul.f32 0.00390625, %v162_v23  ;;  %v165_v29 = vpop.xlane.xlu1 %164 }
 0x12c   :  { %v179_v31 = vadd.f32 1e-05, %v175_v22  ;;  %v169_v32 = vmul.f32 0.00390625, %v165_v29 }
 0x12d   :  { %1032 = vrsqrt.f32 %v178_v25  ;;  %v176_v33 = vsub.f32 %v168_v26, %v172_v24 }
 0x12e   :  { %1034 = vrsqrt.f32 %v179_v31  ;;  %v177_v34 = vsub.f32 %v169_v32, %v173_v30 }
 0x12f   :  { %v180_v35 = vadd.f32 1e-05, %v176_v33 }
 0x130   :  { %v181_v38 = vadd.f32 1e-05, %v177_v34 }
 0x131   :  { %1036 = vrsqrt.f32 %v180_v35 }
 0x132   :  { %1038 = vrsqrt.f32 %v181_v38 }
 0x137   :  { %v1033_v41 = vpop.eup %1032 }
 0x138   :  { %v1035_v42 = vpop.eup %1034  ;;  %v186_v43 = vmul.f32 %v1033_v41, %v126_v39 }
 0x139   :  { %v187_v44 = vmul.f32 %v1035_v42, %v127_v40 }
 0x13a   :  { %v190_v46 = vmul.f32 %v186_v43, %v142_v10 }
 0x13b   :  { %v1037_v48 = vpop.eup %1036  ;;  %v191_v49 = vmul.f32 %v187_v44, %v143_v12 }
 0x13c   :  { %v1039_v50 = vpop.eup %1038  ;;  %198 = vrot.lane.b32.xlu0 %v190_v46, %s1090_s13  ;;  %v188_v55 = vmul.f32 %v1037_v48, %v128_v45  ;;  %v286_v46 = vld [vmem:[%s1420_s2] sm:$0xff]  ;;  %v288_v48 = vld [vmem:[%s1420_s2 + $0x10] sm:$0xff] }
 0x13d   :  { %200 = vrot.lane.b32.xlu1 %v191_v49, %s1090_s13  ;;  %v189_v56 = vmul.f32 %v1039_v50, %v129_v47  ;;  %v289_v49 = vld [vmem:[%s1420_s2 + $0x18] sm:$0xff] }
 0x13e   :  { %v192_v57 = vmul.f32 %v188_v55, %v144_v15 }
 0x13f   :  { %v193_v58 = vmul.f32 %v189_v56, %v145_v19 }
 0x141   :  { %202 = vrot.lane.b32.xlu1 %v192_v57, %s1090_s13  ;;  %204 = vrot.lane.b32.xlu0 %v193_v58, %s1090_s13 }
 0x145   :  { %216 = vperm.xlu1 %1018, %v186_v43   ;;  %221 = vperm.xlu0 %1019, %v187_v44  }
 0x149   :  { %231 = vperm.xlu1 %1018, %v189_v56   ;;  %226 = vperm.xlu0 %1019, %v188_v55  }
 0x14d   :  { %1020 = vset.pattern.permute.xlu1 %v1088_v1  ;;  %1021 = vset.pattern.permute.xlu0 %v1088_v1 }
 0x1ae   :  { %v199_v59 = vpop.permute.xlu0 %198 }
 0x1af   :  { %v210_v60 = vsub.f32 %v126_v39, %v199_v59  ;;  %v201_v61 = vpop.permute.xlu1 %200 }
 0x1b0   :  { %v211_v62 = vsub.f32 %v127_v40, %v201_v61 }
 0x1b1   :  { %244 = vperm.xlu1 %1020, %v210_v60  }
 0x1b3   :  { %v203_v63 = vpop.permute.xlu1 %202  ;;  %v205_v0 = vpop.permute.xlu0 %204 }
 0x1b4   :  { %v212_v3 = vsub.f32 %v128_v45, %v203_v63  ;;  %v213_v4 = vsub.f32 %v129_v47, %v205_v0  ;;  %v287_v47 = vld [vmem:[%s1420_s2 + $0x8] sm:$0xff] }
 0x1b5   :  { %249 = vperm.xlu1 %1020, %v211_v62  }
 0x1b6   :  { %254 = vperm.xlu0 %1021, %v212_v3  }
 0x1b9   :  { %259 = vperm.xlu1 %1020, %v213_v4  }
 0x1ba   :  { %1023 = vset.pattern.permute.xlu0 %v1089_v2 }
 0x1bd   :  { %1022 = vset.pattern.permute.xlu1 %v1089_v2 }
 0x1c4   :  { %v217_v6 = vpop.permute.xlu1 %216  ;;  %v222_v7 = vpop.permute.xlu0 %221 }
 0x1c5   :  { %v234_v9 = vmul.f32 %v217_v6, %v1150_v27  ;;  %v235_v10 = vmul.f32 %v217_v6, %v1152_v28  ;;  %v236_v15 = vmul.f32 %v222_v7, %v1156_v36  ;;  %v237_v16 = vmul.f32 %v222_v7, %v1158_v37 }
 0x1c8   :  { %v232_v8 = vpop.permute.xlu1 %231  ;;  %v227_v12 = vpop.permute.xlu0 %226 }
 0x1c9   :  { %v238_v17 = vmul.f32 %v227_v12, %v1162_v51  ;;  %v239_v18 = vmul.f32 %v227_v12, %v1164_v52  ;;  %v240_v25 = vmul.f32 %v232_v8, %v1166_v53  ;;  %v241_v26 = vmul.f32 %v232_v8, %v1168_v54 }
 0x230   :  { %v245_v11 = vpop.permute.xlu1 %244 }
 0x231   :  { %v262_v13 = vadd.f32 %v245_v11, %v234_v9  ;;  %v263_v14 = vadd.f32 %v245_v11, %v235_v10 }
 0x233   :  { %v270_v19 = vmax.f32 %v262_v13, 0.0  ;;  %v271_v20 = vmax.f32 %v263_v14, 0.0 }
 0x234   :  { %v250_v21 = vpop.permute.xlu1 %249 }
 0x235   :  { %v264_v22 = vadd.f32 %v250_v21, %v236_v15  ;;  %v265_v23 = vadd.f32 %v250_v21, %v237_v16  ;;  %v255_v27 = vpop.permute.xlu0 %254  ;;  %v278_v30 = vmin.f32 %v270_v19, 6.0  ;;  %v279_v32 = vmin.f32 %v271_v20, 6.0 }
 0x236   :  { %v266_v24 = vadd.f32 %v255_v27, %v238_v17  ;;  %v267_v28 = vadd.f32 %v255_v27, %v239_v18 }
 0x237   :  { %v272_v29 = vmax.f32 %v264_v22, 0.0  ;;  %v273_v36 = vmax.f32 %v265_v23, 0.0 }
 0x238   :  { %v274_v37 = vmax.f32 %v266_v24, 0.0  ;;  %v275_v31 = vmax.f32 %v267_v28, 0.0  ;;  %v260_v51 = vpop.permute.xlu1 %259 }
 0x239   :  { %v280_v52 = vmin.f32 %v272_v29, 6.0  ;;  %v268_v33 = vadd.f32 %v260_v51, %v240_v25  ;;  %v269_v34 = vadd.f32 %v260_v51, %v241_v26  ;;  %v281_v35 = vmin.f32 %v273_v36, 6.0 }
 0x23a   :  { %v282_v42 = vmin.f32 %v274_v37, 6.0  ;;  %v283_v43 = vmin.f32 %v275_v31, 6.0 }
 0x23b   :  { %v276_v38 = vmax.f32 %v268_v33, 0.0  ;;  %v277_v39 = vmax.f32 %v269_v34, 0.0  ;;  %v984_v40 = vpack.c.bf16 %v281_v35, %v279_v32  ;;  %v986_v41 = vpack.c.bf16 %v280_v52, %v278_v30 }
 0x23d   :  { %v284_v53 = vmin.f32 %v276_v38, 6.0  ;;  %v285_v44 = vmin.f32 %v277_v39, 6.0  ;;  %985 = vmatprep.subr.bf16.mxu0 %v984_v40  ;;  %v967_v40 = vld [vmem:[%s1421_s3 + $0x20] sm:$0xff] }
 0x23e   :  { %987 = vmatpush1.bf16.msra.mxu0 %v986_v41 }
 0x23f   :  { %v988_v54 = vpack.c.bf16 %v285_v44, %v283_v43  ;;  %v990_v45 = vpack.c.bf16 %v284_v53, %v282_v42 }
 0x241   :  { %989 = vmatprep.subr.bf16.mxu0 %v988_v54 }
 0x242   :  { %991 = vmatpush1.bf16.msra.mxu0 %v990_v45  ;;  %v968_v45 = vld [vmem:[%s1421_s3 + $0x28] sm:$0xff] }
 0x245   :  { %963 = vmatmul.mubr.msk.f32.vlgmr.msra.gmra.mrb[0].mxu0 %vm290_vm0, %v286_v46 }
 0x246   :  { %373 = vmatprep.mubr.f32.mxu0 %v1091_v5 }
 0x249   :  { %964 = vmatmul.mubr.msk.f32.gmra.mrb[2].mxu0 %vm290_vm0, %v287_v47 }
 0x24a   :  { %379 = vmatprep.mubr.f32.mxu0 %v1091_v5 }
 0x24d   :  { %965 = vmatmul.mubr.msk.f32.gmra.mrb[4].mxu0 %vm290_vm0, %v288_v48 }
 0x24e   :  { %385 = vmatprep.mubr.f32.mxu0 %v1091_v5 }
 0x251   :  { %966 = vmatmul.mubr.msk.f32.gmra.mrb[6].mxu0 %vm290_vm0, %v289_v49  ;;  %v969_v49 = vld [vmem:[%s1421_s3 + $0x30] sm:$0xff] }
 0x252   :  { %894 = vmatprep.mubr.f32.mxu0 %v1091_v5 }
 0x318   :  { %v1240_v50 = vpop.f32.mrb[0].mxu0 }
 0x319   :  { %v1242_v55 = vpop.f32.mrb[1].mxu0  ;;  %v413_v56 = vmul.f32 %v1240_v50, %v1240_v50 }
 0x31a   :  { %v397_v57 = vadd.f32 %v1242_v55, %v1240_v50  ;;  %v414_v58 = vmul.f32 %v1242_v55, %v1242_v55 }
 0x31c   :  { %398 = vadd.xlane.f32.xlu1 %v397_v57  ;;  %v1250_v59 = vpop.f32.mrb[2].mxu0  ;;  %v421_v60 = vadd.f32 %v414_v58, %v413_v56  ;;  %v970_v57 = vld [vmem:[%s1421_s3 + $0x38] sm:$0xff] }
 0x31d   :  { %v1252_v61 = vpop.f32.mrb[3].mxu0  ;;  %v415_v62 = vmul.f32 %v1250_v59, %v1250_v59 }
 0x31e   :  { %422 = vadd.xlane.f32.xlu0 %v421_v60  ;;  %v416_v63 = vmul.f32 %v1252_v61, %v1252_v61  ;;  %v400_v0 = vadd.f32 %v1252_v61, %v1250_v59 }
 0x320   :  { %v1260_v3 = vpop.f32.mrb[4].mxu0  ;;  %v424_v4 = vadd.f32 %v416_v63, %v415_v62 }
 0x321   :  { %v1262_v6 = vpop.f32.mrb[5].mxu0  ;;  %v417_v7 = vmul.f32 %v1260_v3, %v1260_v3 }
 0x322   :  { %425 = vadd.xlane.f32.xlu1 %v424_v4  ;;  %401 = vadd.xlane.f32.xlu0 %v400_v0  ;;  %v403_v8 = vadd.f32 %v1262_v6, %v1260_v3  ;;  %v418_v9 = vmul.f32 %v1262_v6, %v1262_v6 }
 0x324   :  { %v1270_v10 = vpop.f32.mrb[6].mxu0  ;;  %v427_v11 = vadd.f32 %v418_v9, %v417_v7 }
 0x325   :  { %v1272_v12 = vpop.f32.mrb[7].mxu0  ;;  %v419_v13 = vmul.f32 %v1270_v10, %v1270_v10 }
 0x326   :  { %404 = vadd.xlane.f32.xlu0 %v403_v8  ;;  %v406_v14 = vadd.f32 %v1272_v12, %v1270_v10  ;;  %v420_v15 = vmul.f32 %v1272_v12, %v1272_v12 }
 0x328   :  { %407 = vadd.xlane.f32.xlu1 %v406_v14  ;;  %v430_v16 = vadd.f32 %v420_v15, %v419_v13 }
 0x32a   :  { %428 = vadd.xlane.f32.xlu0 %v427_v11 }
 0x32c   :  { %431 = vadd.xlane.f32.xlu1 %v430_v16 }
 0x3a9   :  { %v399_v17 = vpop.xlane.xlu1 %398 }
 0x3aa   :  { %v409_v18 = vmul.f32 0.00390625, %v399_v17 }
 0x3ab   :  { %v423_v19 = vpop.xlane.xlu0 %422 }
 0x3ac   :  { %v437_v20 = vmul.f32 %v409_v18, %v409_v18  ;;  %v433_v21 = vmul.f32 0.00390625, %v423_v19 }
 0x3ae   :  { %v441_v22 = vsub.f32 %v433_v21, %v437_v20 }
 0x3af   :  { %v426_v23 = vpop.xlane.xlu1 %425  ;;  %v402_v27 = vpop.xlane.xlu0 %401 }
 0x3b0   :  { %v445_v24 = vadd.f32 1e-05, %v441_v22  ;;  %v410_v28 = vmul.f32 0.00390625, %v402_v27  ;;  %v434_v25 = vmul.f32 0.00390625, %v426_v23 }
 0x3b2   :  { %1040 = vrsqrt.f32 %v445_v24  ;;  %v438_v26 = vmul.f32 %v410_v28, %v410_v28 }
 0x3b3   :  { %v405_v29 = vpop.xlane.xlu0 %404 }
 0x3b4   :  { %v442_v36 = vsub.f32 %v434_v25, %v438_v26  ;;  %v411_v30 = vmul.f32 0.00390625, %v405_v29 }
 0x3b5   :  { %v408_v37 = vpop.xlane.xlu1 %407 }
 0x3b6   :  { %v446_v31 = vadd.f32 1e-05, %v442_v36  ;;  %v412_v51 = vmul.f32 0.00390625, %v408_v37  ;;  %v439_v52 = vmul.f32 %v411_v30, %v411_v30 }
 0x3b7   :  { %v429_v32 = vpop.xlane.xlu0 %428 }
 0x3b8   :  { %1042 = vrsqrt.f32 %v446_v31  ;;  %v435_v33 = vmul.f32 0.00390625, %v429_v32  ;;  %v440_v35 = vmul.f32 %v412_v51, %v412_v51 }
 0x3b9   :  { %v432_v34 = vpop.xlane.xlu1 %431 }
 0x3ba   :  { %v443_v38 = vsub.f32 %v435_v33, %v439_v52  ;;  %v436_v39 = vmul.f32 0.00390625, %v432_v34 }
 0x3bc   :  { %v1041_v41 = vpop.eup %1040  ;;  %v447_v42 = vadd.f32 1e-05, %v443_v38  ;;  %v444_v43 = vsub.f32 %v436_v39, %v440_v35 }
 0x3bd   :  { %v453_v53 = vmul.f32 %v1041_v41, %v967_v40 }
 0x3be   :  { %1044 = vrsqrt.f32 %v447_v42  ;;  %v448_v44 = vadd.f32 1e-05, %v444_v43 }
 0x3bf   :  { %v457_v54 = vmul.f32 %v453_v53, %v409_v18 }
 0x3c0   :  { %1046 = vrsqrt.f32 %v448_v44 }
 0x3c1   :  { %465 = vrot.lane.b32.xlu0 %v457_v54, %s1090_s13 }
 0x3c2   :  { %v1043_v46 = vpop.eup %1042 }
 0x3c3   :  { %v454_v47 = vmul.f32 %v1043_v46, %v968_v45 }
 0x3c5   :  { %v458_v48 = vmul.f32 %v454_v47, %v410_v28 }
 0x3c7   :  { %467 = vrot.lane.b32.xlu1 %v458_v48, %s1090_s13  ;;  %v971_v48 = vld [vmem:[%s1420_s2 + $0x20] sm:$0xff] }
 0x3c8   :  { %v1045_v56 = vpop.eup %1044 }
 0x3c9   :  { %v455_v58 = vmul.f32 %v1045_v56, %v969_v49  ;;  %v973_v56 = vld [vmem:[%s1420_s2 + $0x30] sm:$0xff] }
 0x3ca   :  { %v1047_v60 = vpop.eup %1046 }
 0x3cb   :  { %v459_v62 = vmul.f32 %v455_v58, %v411_v30  ;;  %v456_v63 = vmul.f32 %v1047_v60, %v970_v57 }
 0x3cd   :  { %469 = vrot.lane.b32.xlu1 %v459_v62, %s1090_s13  ;;  %v460_v0 = vmul.f32 %v456_v63, %v412_v51 }
 0x3cf   :  { %471 = vrot.lane.b32.xlu0 %v460_v0, %s1090_s13 }
 0x3d1   :  { %483 = vperm.xlu1 %1022, %v453_v53  }
 0x3d3   :  { %488 = vperm.xlu0 %1023, %v454_v47  }
 0x3d5   :  { %498 = vperm.xlu1 %1022, %v456_v63  }
 0x3d7   :  { %493 = vperm.xlu0 %1023, %v455_v58  }
 0x3d9   :  { %1024 = vset.pattern.permute.xlu1 %v1088_v1 }
 0x3db   :  { %1025 = vset.pattern.permute.xlu0 %v1088_v1 }
 0x433   :  { %v466_v4 = vpop.permute.xlu0 %465 }
 0x434   :  { %v477_v7 = vsub.f32 %v967_v40, %v466_v4 }
 0x436   :  { %511 = vperm.xlu1 %1024, %v477_v7  }
 0x439   :  { %v468_v8 = vpop.permute.xlu1 %467 }
 0x43a   :  { %v478_v9 = vsub.f32 %v968_v45, %v468_v8 }
 0x43c   :  { %516 = vperm.xlu1 %1024, %v478_v9  }
 0x43f   :  { %v470_v11 = vpop.permute.xlu1 %469 }
 0x440   :  { %v479_v13 = vsub.f32 %v969_v49, %v470_v11  ;;  %v972_v49 = vld [vmem:[%s1420_s2 + $0x28] sm:$0xff] }
 0x441   :  { %v472_v14 = vpop.permute.xlu0 %471 }
 0x442   :  { %v480_v15 = vsub.f32 %v970_v57, %v472_v14  ;;  %521 = vperm.xlu0 %1025, %v479_v13   ;;  %v974_v57 = vld [vmem:[%s1420_s2 + $0x38] sm:$0xff] }
 0x444   :  { %526 = vperm.xlu1 %1024, %v480_v15  }
 0x446   :  { %1027 = vset.pattern.permute.xlu0 %v1089_v2 }
 0x448   :  { %1026 = vset.pattern.permute.xlu1 %v1089_v2 }
 0x450   :  { %v484_v16 = vpop.permute.xlu1 %483 }
 0x451   :  { %v501_v19 = vmul.f32 %v484_v16, %v1240_v50  ;;  %v502_v20 = vmul.f32 %v484_v16, %v1242_v55 }
 0x452   :  { %v489_v21 = vpop.permute.xlu0 %488 }
 0x453   :  { %v503_v27 = vmul.f32 %v489_v21, %v1250_v59  ;;  %v504_v24 = vmul.f32 %v489_v21, %v1252_v61 }
 0x454   :  { %v499_v17 = vpop.permute.xlu1 %498 }
 0x455   :  { %v507_v59 = vmul.f32 %v499_v17, %v1270_v10  ;;  %v508_v61 = vmul.f32 %v499_v17, %v1272_v12 }
 0x456   :  { %v494_v25 = vpop.permute.xlu0 %493 }
 0x457   :  { %v505_v51 = vmul.f32 %v494_v25, %v1260_v3  ;;  %v506_v50 = vmul.f32 %v494_v25, %v1262_v6 }
 0x4b5   :  { %v512_v18 = vpop.permute.xlu1 %511 }
 0x4b6   :  { %v529_v22 = vadd.f32 %v512_v18, %v501_v19  ;;  %v530_v23 = vadd.f32 %v512_v18, %v502_v20 }
 0x4b8   :  { %v537_v26 = vmax.f32 %v529_v22, 0.0  ;;  %v538_v29 = vmax.f32 %v530_v23, 0.0 }
 0x4ba   :  { %v545_v55 = vmin.f32 %v537_v26, 6.0  ;;  %v546_v52 = vmin.f32 %v538_v29, 6.0 }
 0x4bb   :  { %v517_v28 = vpop.permute.xlu1 %516 }
 0x4bc   :  { %v531_v36 = vadd.f32 %v517_v28, %v503_v27  ;;  %v532_v30 = vadd.f32 %v517_v28, %v504_v24 }
 0x4be   :  { %v539_v37 = vmax.f32 %v531_v36, 0.0  ;;  %v540_v31 = vmax.f32 %v532_v30, 0.0 }
 0x4c0   :  { %v547_v32 = vmin.f32 %v539_v37, 6.0  ;;  %v548_v33 = vmin.f32 %v540_v31, 6.0 }
 0x4c1   :  { %v522_v34 = vpop.permute.xlu0 %521 }
 0x4c2   :  { %v533_v35 = vadd.f32 %v522_v34, %v505_v51  ;;  %v534_v38 = vadd.f32 %v522_v34, %v506_v50  ;;  %v992_v39 = vpack.c.bf16 %v548_v33, %v546_v52  ;;  %v994_v40 = vpack.c.bf16 %v547_v32, %v545_v55 }
 0x4c3   :  { %v527_v41 = vpop.permute.xlu1 %526 }
 0x4c4   :  { %v541_v42 = vmax.f32 %v533_v35, 0.0  ;;  %v542_v43 = vmax.f32 %v534_v38, 0.0  ;;  %v535_v53 = vadd.f32 %v527_v41, %v507_v59  ;;  %v536_v3 = vadd.f32 %v527_v41, %v508_v61  ;;  %993 = vmatprep.subr.bf16.mxu1 %v992_v39 }
 0x4c5   :  { %995 = vmatpush1.bf16.msra.mxu1 %v994_v40 }
 0x4c6   :  { %v543_v6 = vmax.f32 %v535_v53, 0.0  ;;  %v544_v44 = vmax.f32 %v536_v3, 0.0  ;;  %v549_v54 = vmin.f32 %v541_v42, 6.0  ;;  %v550_v45 = vmin.f32 %v542_v43, 6.0  ;;  %v979_v3 = vld [vmem:[%s1421_s3 + $0x40] sm:$0xff] }
 0x4c8   :  { %v551_v46 = vmin.f32 %v543_v6, 6.0  ;;  %v552_v10 = vmin.f32 %v544_v44, 6.0 }
 0x4ca   :  { %v996_v47 = vpack.c.bf16 %v552_v10, %v550_v45  ;;  %v998_v12 = vpack.c.bf16 %v551_v46, %v549_v54 }
 0x4cc   :  { %997 = vmatprep.subr.bf16.mxu1 %v996_v47  ;;  %v980_v47 = vld [vmem:[%s1421_s3 + $0x48] sm:$0xff] }
 0x4cd   :  { %999 = vmatpush1.bf16.msra.mxu1 %v998_v12 }
 0x4d0   :  { %975 = vmatmul.mubr.msk.f32.vlgmr.msra.gmra.mrb[0].mxu1 %vm290_vm0, %v971_v48 }
 0x4d1   :  { %640 = vmatprep.mubr.f32.mxu1 %v1091_v5 }
 0x4d4   :  { %976 = vmatmul.mubr.msk.f32.gmra.mrb[2].mxu1 %vm290_vm0, %v972_v49 }
 0x4d5   :  { %646 = vmatprep.mubr.f32.mxu1 %v1091_v5 }
 0x4d8   :  { %977 = vmatmul.mubr.msk.f32.gmra.mrb[4].mxu1 %vm290_vm0, %v973_v56  ;;  %v981_v56 = vld [vmem:[%s1421_s3 + $0x50] sm:$0xff] }
 0x4d9   :  { %652 = vmatprep.mubr.f32.mxu1 %v1091_v5 }
 0x4dc   :  { %978 = vmatmul.mubr.msk.f32.gmra.mrb[6].mxu1 %vm290_vm0, %v974_v57 }
 0x5a3   :  { %v1327_v58 = vpop.f32.mrb[0].mxu1 }
 0x5a4   :  { %v1329_v60 = vpop.f32.mrb[1].mxu1  ;;  %v680_v62 = vmul.f32 %v1327_v58, %v1327_v58 }
 0x5a5   :  { %v664_v63 = vadd.f32 %v1329_v60, %v1327_v58  ;;  %v681_v0 = vmul.f32 %v1329_v60, %v1329_v60 }
 0x5a7   :  { %665 = vadd.xlane.f32.xlu1 %v664_v63  ;;  %v1337_v5 = vpop.f32.mrb[2].mxu1  ;;  %v688_v4 = vadd.f32 %v681_v0, %v680_v62  ;;  %v982_v62 = vld [vmem:[%s1421_s3 + $0x58] sm:$0xff] }
 0x5a8   :  { %v1339_v7 = vpop.f32.mrb[3].mxu1  ;;  %v682_v8 = vmul.f32 %v1337_v5, %v1337_v5 }
 0x5a9   :  { %689 = vadd.xlane.f32.xlu0 %v688_v4  ;;  %v683_v9 = vmul.f32 %v1339_v7, %v1339_v7  ;;  %v667_v11 = vadd.f32 %v1339_v7, %v1337_v5 }
 0x5ab   :  { %v1347_v13 = vpop.f32.mrb[4].mxu1  ;;  %v691_v14 = vadd.f32 %v683_v9, %v682_v8 }
 0x5ac   :  { %v1349_v15 = vpop.f32.mrb[5].mxu1  ;;  %v684_v16 = vmul.f32 %v1347_v13, %v1347_v13 }
 0x5ad   :  { %692 = vadd.xlane.f32.xlu1 %v691_v14  ;;  %668 = vadd.xlane.f32.xlu0 %v667_v11  ;;  %v670_v17 = vadd.f32 %v1349_v15, %v1347_v13  ;;  %v685_v18 = vmul.f32 %v1349_v15, %v1349_v15 }
 0x5af   :  { %v1357_v19 = vpop.f32.mrb[6].mxu1  ;;  %v694_v20 = vadd.f32 %v685_v18, %v684_v16 }
 0x5b0   :  { %v1359_v21 = vpop.f32.mrb[7].mxu1  ;;  %v686_v22 = vmul.f32 %v1357_v19, %v1357_v19 }
 0x5b1   :  { %v687_v23 = vmul.f32 %v1359_v21, %v1359_v21  ;;  %671 = vadd.xlane.f32.xlu0 %v670_v17  ;;  %v673_v27 = vadd.f32 %v1359_v21, %v1357_v19 }
 0x5b3   :  { %674 = vadd.xlane.f32.xlu1 %v673_v27  ;;  %v697_v24 = vadd.f32 %v687_v23, %v686_v22 }
 0x5b5   :  { %695 = vadd.xlane.f32.xlu0 %v694_v20 }
 0x5b7   :  { %698 = vadd.xlane.f32.xlu1 %v697_v24 }
 0x634   :  { %v666_v28 = vpop.xlane.xlu1 %665 }
 0x635   :  { %v676_v25 = vmul.f32 0.00390625, %v666_v28 }
 0x636   :  { %v690_v26 = vpop.xlane.xlu0 %689 }
 0x637   :  { %v704_v29 = vmul.f32 %v676_v25, %v676_v25  ;;  %v700_v36 = vmul.f32 0.00390625, %v690_v26 }
 0x639   :  { %v708_v30 = vsub.f32 %v700_v36, %v704_v29 }
 0x63a   :  { %v693_v37 = vpop.xlane.xlu1 %692  ;;  %v669_v31 = vpop.xlane.xlu0 %668 }
 0x63b   :  { %v712_v51 = vadd.f32 1e-05, %v708_v30  ;;  %v677_v50 = vmul.f32 0.00390625, %v669_v31  ;;  %v701_v55 = vmul.f32 0.00390625, %v693_v37 }
 0x63d   :  { %1048 = vrsqrt.f32 %v712_v51  ;;  %v705_v32 = vmul.f32 %v677_v50, %v677_v50 }
 0x63e   :  { %v672_v52 = vpop.xlane.xlu0 %671 }
 0x63f   :  { %v709_v33 = vsub.f32 %v701_v55, %v705_v32  ;;  %v678_v59 = vmul.f32 0.00390625, %v672_v52 }
 0x640   :  { %v675_v61 = vpop.xlane.xlu1 %674 }
 0x641   :  { %v713_v34 = vadd.f32 1e-05, %v709_v33  ;;  %v679_v35 = vmul.f32 0.00390625, %v675_v61  ;;  %v706_v39 = vmul.f32 %v678_v59, %v678_v59 }
 0x642   :  { %v696_v38 = vpop.xlane.xlu0 %695 }
 0x643   :  { %1050 = vrsqrt.f32 %v713_v34  ;;  %v702_v40 = vmul.f32 0.00390625, %v696_v38  ;;  %v707_v42 = vmul.f32 %v679_v35, %v679_v35 }
 0x644   :  { %v699_v41 = vpop.xlane.xlu1 %698 }
 0x645   :  { %v710_v43 = vsub.f32 %v702_v40, %v706_v39  ;;  %v703_v53 = vmul.f32 0.00390625, %v699_v41 }
 0x647   :  { %v1049_v6 = vpop.eup %1048  ;;  %v714_v44 = vadd.f32 1e-05, %v710_v43  ;;  %v711_v54 = vsub.f32 %v703_v53, %v707_v42 }
 0x648   :  { %v720_v45 = vmul.f32 %v1049_v6, %v979_v3 }
 0x649   :  { %1052 = vrsqrt.f32 %v714_v44  ;;  %v715_v46 = vadd.f32 1e-05, %v711_v54 }
 0x64a   :  { %v724_v10 = vmul.f32 %v720_v45, %v676_v25 }
 0x64b   :  { %1054 = vrsqrt.f32 %v715_v46 }
 0x64c   :  { %732 = vrot.lane.b32.xlu0 %v724_v10, %s1090_s13 }
 0x64d   :  { %v1051_v12 = vpop.eup %1050 }
 0x64e   :  { %v721_v48 = vmul.f32 %v1051_v12, %v980_v47  ;;  %v820_v12 = vld [vmem:[%s1422_s4] sm:$0xf]  ;;  %s1092_s4 = smov [#allocation2]  }
 0x64f   :  { %s955_s21 = sshll.u32 %s1092_s4, 4  ;;  %s956_s21 = int_to_ptr.vmem [resolvable:$true] %s955_s21 }
 0x650   :  { %v725_v49 = vmul.f32 %v721_v48, %v677_v50  ;;  %s1064_s22 = scalar_lea.vmem %s956_s21, 128  ;;  %p1069_p1 = scmp.lt.s32.totalorder %s956_s21, %s956_s21 }
 0x651   :  { %p1065_p0 = scmp.ne.s32.totalorder %s956_s21, %s1064_s22  ;;  %p1070_p2 = scmp.lt.s32.totalorder %s1064_s22, %s1064_s22 }
 0x652   :  { %734 = vrot.lane.b32.xlu1 %v725_v49, %s1090_s13 }
 0x653   :  { %v1053_v57 = vpop.eup %1052  ;;  %p1071_p3 = por %p1070_p2, %p1069_p1 }
 0x654   :  { %v722_v63 = vmul.f32 %v1053_v57, %v981_v56 }
 0x655   :  { %v1055_v0 = vpop.eup %1054  ;;  %p1072_p4 = pnand %p1071_p3, %p1065_p0 }
 0x656   :  { %v726_v4 = vmul.f32 %v722_v63, %v678_v59  ;;  %v723_v8 = vmul.f32 %v1055_v0, %v982_v62 }
 0x658   :  { %736 = vrot.lane.b32.xlu1 %v726_v4, %s1090_s13  ;;  %v727_v9 = vmul.f32 %v723_v8, %v679_v35 }
 0x65a   :  { %738 = vrot.lane.b32.xlu0 %v727_v9, %s1090_s13 }
 0x65c   :  { %750 = vperm.xlu1 %1026, %v720_v45  }
 0x65e   :  { %755 = vperm.xlu0 %1027, %v721_v48  }
 0x660   :  { %765 = vperm.xlu1 %1026, %v723_v8  }
 0x662   :  { %760 = vperm.xlu0 %1027, %v722_v63  }
 0x664   :  { %1028 = vset.pattern.permute.xlu1 %v1088_v1 }
 0x666   :  { %1029 = vset.pattern.permute.xlu0 %v1088_v1  ;;  %v821_v1 = vld [vmem:[%s1423_s5] sm:$0xf] }
 0x6be   :  { %v733_v11 = vpop.permute.xlu0 %732 }
 0x6bf   :  { %v744_v14 = vsub.f32 %v979_v3, %v733_v11 }
 0x6c1   :  { %778 = vperm.xlu1 %1028, %v744_v14  }
 0x6c4   :  { %v735_v16 = vpop.permute.xlu1 %734 }
 0x6c5   :  { %v745_v17 = vsub.f32 %v980_v47, %v735_v16 }
 0x6c7   :  { %783 = vperm.xlu1 %1028, %v745_v17  }
 0x6ca   :  { %v737_v18 = vpop.permute.xlu1 %736 }
 0x6cb   :  { %v746_v20 = vsub.f32 %v981_v56, %v737_v18 }
 0x6cc   :  { %v739_v22 = vpop.permute.xlu0 %738 }
 0x6cd   :  { %v747_v23 = vsub.f32 %v982_v62, %v739_v22  ;;  %788 = vperm.xlu0 %1029, %v746_v20  }
 0x6cf   :  { %793 = vperm.xlu1 %1028, %v747_v23  }
 0x6d1   :  { %1031 = vset.pattern.permute.xlu0 %v1089_v2 }
 0x6d3   :  { %1030 = vset.pattern.permute.xlu1 %v1089_v2 }
 0x6d4   :  { %824 = vperm.xlu1 %1030, %v821_v1  }
 0x6db   :  { %v751_v27 = vpop.permute.xlu1 %750 }
 0x6dc   :  { %v768_v25 = vmul.f32 %v751_v27, %v1327_v58  ;;  %v769_v26 = vmul.f32 %v751_v27, %v1329_v60 }
 0x6dd   :  { %v756_v29 = vpop.permute.xlu0 %755 }
 0x6de   :  { %v770_v37 = vmul.f32 %v756_v29, %v1337_v5  ;;  %v771_v31 = vmul.f32 %v756_v29, %v1339_v7 }
 0x6df   :  { %v766_v24 = vpop.permute.xlu1 %765 }
 0x6e0   :  { %v774_v5 = vmul.f32 %v766_v24, %v1357_v19  ;;  %v775_v7 = vmul.f32 %v766_v24, %v1359_v21 }
 0x6e1   :  { %v761_v51 = vpop.permute.xlu0 %760 }
 0x6e2   :  { %v772_v61 = vmul.f32 %v761_v51, %v1347_v13  ;;  %v773_v58 = vmul.f32 %v761_v51, %v1349_v15 }
 0x740   :  { %v779_v28 = vpop.permute.xlu1 %778 }
 0x741   :  { %v796_v36 = vadd.f32 %v779_v28, %v768_v25  ;;  %v797_v30 = vadd.f32 %v779_v28, %v769_v26 }
 0x743   :  { %v804_v50 = vmax.f32 %v796_v36, 0.0  ;;  %v805_v55 = vmax.f32 %v797_v30, 0.0 }
 0x745   :  { %v812_v60 = vmin.f32 %v804_v50, 6.0  ;;  %v813_v34 = vmin.f32 %v805_v55, 6.0 }
 0x746   :  { %v784_v2 = vpop.permute.xlu1 %783 }
 0x747   :  { %v798_v32 = vadd.f32 %v784_v2, %v770_v37  ;;  %v799_v52 = vadd.f32 %v784_v2, %v771_v31 }
 0x749   :  { %v806_v33 = vmax.f32 %v798_v32, 0.0  ;;  %v807_v59 = vmax.f32 %v799_v52, 0.0 }
 0x74b   :  { %v814_v35 = vmin.f32 %v806_v33, 6.0  ;;  %v815_v38 = vmin.f32 %v807_v59, 6.0 }
 0x74c   :  { %v789_v39 = vpop.permute.xlu0 %788 }
 0x74d   :  { %v1002_v40 = vpack.c.bf16 %v814_v35, %v812_v60  ;;  %v800_v41 = vadd.f32 %v789_v39, %v772_v61  ;;  %v801_v42 = vadd.f32 %v789_v39, %v773_v58  ;;  %v1000_v43 = vpack.c.bf16 %v815_v38, %v813_v34 }
 0x74e   :  { %v794_v53 = vpop.permute.xlu1 %793 }
 0x74f   :  { %v808_v3 = vmax.f32 %v800_v41, 0.0  ;;  %v809_v6 = vmax.f32 %v801_v42, 0.0  ;;  %v802_v44 = vadd.f32 %v794_v53, %v774_v5  ;;  %v803_v13 = vadd.f32 %v794_v53, %v775_v7  ;;  %1001 = vmatprep.subr.bf16.mxu0 %v1000_v43 }
 0x750   :  { %1003 = vmatpush1.bf16.msra.mxu0 %v1002_v40 }
 0x751   :  { %v810_v15 = vmax.f32 %v802_v44, 0.0  ;;  %v811_v54 = vmax.f32 %v803_v13, 0.0  ;;  %v816_v45 = vmin.f32 %v808_v3, 6.0  ;;  %v817_v46 = vmin.f32 %v809_v6, 6.0 }
 0x753   :  { %v818_v10 = vmin.f32 %v810_v15, 6.0  ;;  %v819_v19 = vmin.f32 %v811_v54, 6.0  ;;  %v825_v48 = vpop.permute.xlu1 %824 }
 0x755   :  { %v1006_v47 = vpack.c.bf16 %v818_v10, %v816_v45  ;;  %v1004_v21 = vpack.c.bf16 %v819_v19, %v817_v46 }
 0x757   :  { %1005 = vmatprep.subr.bf16.mxu0 %v1004_v21 }
 0x758   :  { %1007 = vmatpush1.bf16.msra.mxu0 %v1006_v47 }
 0x75b   :  { %983 = vmatmul.mubr.msk.f32.vlgmr.msra.gmra.mrb[8].mxu0 %vm290_vm0, %v820_v12 }
 0x82e   :  { %v896_v49 = vpop.f32.mrb[8].mxu0 }
 0x82f   :  { %v897_v56 = vadd.f32 %v896_v49, %v825_v48  ;;  %v898_v57 = vpop.f32.mrb[9].mxu0 }
 0x830   :  { %v899_v62 = vadd.f32 %v898_v57, %v825_v48 }
 0x831   :  { %v902_v63 = vsel %vm901_vm1, %v897_v56, -inf }
 0x832   :  { %v903_v0 = vrot.slane %v902_v63, 4  ;;  %v909_v4 = vsel %vm901_vm1, %v899_v62, -inf }
 0x833   :  { %v910_v8 = vrot.slane %v909_v4, 4 }
 0x834   :  { %v904_v9 = vmax.f32 %v902_v63, %v903_v0 }
 0x835   :  { %v911_v11 = vmax.f32 %v909_v4, %v910_v8 }
 0x836   :  { %v905_v14 = vrot.slane %v904_v9, 2 }
 0x837   :  { %v912_v16 = vrot.slane %v911_v11, 2 }
 0x838   :  { %v906_v17 = vmax.f32 %v904_v9, %v905_v14 }
 0x839   :  { %v913_v18 = vmax.f32 %v911_v11, %v912_v16 }
 0x83a   :  { %v907_v20 = vrot.slane %v906_v17, 1 }
 0x83b   :  { %v914_v22 = vrot.slane %v913_v18, 1 }
 0x83c   :  { %v908_v23 = vmax.f32 %v906_v17, %v907_v20 }
 0x83d   :  { %v915_v1 = vmax.f32 %v913_v18, %v914_v22 }
 0x83e   :  { %v916_v27 = vsub.f32 %v897_v56, %v908_v23 }
 0x83f   :  { %v917_v24 = vsub.f32 %v899_v62, %v915_v1 }
 0x840   :  { %v918_v28 = vmul.f32 1.442695, %v916_v27 }
 0x841   :  { %v920_v25 = vmul.f32 1.442695, %v917_v24 }
 0x842   :  { %1056 = vpow2.f32 %v918_v28 }
 0x843   :  { %1058 = vpow2.f32 %v920_v25 }
 0x84c   :  { %v1057_v26 = vpop.eup %1056 }
 0x84d   :  { %v1059_v29 = vpop.eup %1058  ;;  %v922_v36 = vsel %vm901_vm1, %v1057_v26, 0.0 }
 0x84e   :  { %v923_v30 = vrot.slane %v922_v36, 4  ;;  %v929_v37 = vsel %vm901_vm1, %v1059_v29, 0.0 }
 0x84f   :  { %v930_v31 = vrot.slane %v929_v37, 4 }
 0x850   :  { %v924_v2 = vadd.f32 %v923_v30, %v922_v36 }
 0x851   :  { %v931_v51 = vadd.f32 %v930_v31, %v929_v37 }
 0x852   :  { %v925_v50 = vrot.slane %v924_v2, 2 }
 0x853   :  { %v932_v55 = vrot.slane %v931_v51, 2 }
 0x854   :  { %v926_v32 = vadd.f32 %v925_v50, %v924_v2 }
 0x855   :  { %v933_v52 = vadd.f32 %v932_v55, %v931_v51 }
 0x856   :  { %v927_v33 = vrot.slane %v926_v32, 1 }
 0x857   :  { %v934_v59 = vrot.slane %v933_v52, 1 }
 0x858   :  { %v928_v61 = vadd.f32 %v927_v33, %v926_v32 }
 0x859   :  { %v935_v58 = vadd.f32 %v934_v59, %v933_v52 }
 0x85a   :  { %1060 = vrcp.f32 %v928_v61 }
 0x85b   :  { %1062 = vrcp.f32 %v935_v58 }
 0x864   :  { %v1061_v60 = vpop.eup %1060 }
 0x865   :  { %v1063_v34 = vpop.eup %1062  ;;  %v940_v35 = vmul.f32 %v1061_v60, %v1057_v26 }
 0x866   :  { %v941_v38 = vmul.f32 %v1063_v34, %v1059_v29 }
 0x867   :  { %v942_v5 = vadd.f32 0.0001, %v940_v35 }
 0x868   :  { %v943_v7 = vadd.f32 0.0001, %v941_v38 }
 0x86a   :  { %v946_v39 = vcombine.low %v942_v5, %v943_v7 }
 0x86c   :  { %948 = vst [vmem:[#allocation2] sm:$0xff] %v946_v39 }
 0x86d   :  { %1075 = shalt.err (!%p1072_p4)
}
 0x86e   :  { %s1076_s25 = scalar_lea.hbm %s1424_s6, 128 }
 0x86f   :  { %p1077_p5 = scmp.ne.s32.totalorder %s1424_s6, %s1076_s25  ;;  %p1080_p6 = scmp.lt.u32.totalorder %s1076_s25, %s1424_s6 }
 0x871   :  { %p1082_p7 = pnand %p1080_p6, %p1077_p5 }
 0x873   :  { %1085 = shalt.err (!%p1082_p7)
}
 0x874   :  { %958 = dma.vmem_to_hbm [thread:$0]  %s956_s21, 128, %s1424_s6, [#allocation3]  }
 0x875   :  { %1086 = dma.done.wait [#allocation3], 128  }
 0x876   :  { %1087 = vsyncadd [#allocation3], 4294967168 }
 0x877   :  { %962 = vsyncpa [#allocation3], 1 }

</bundles_post_ra>
